<compile_context>
chip_gen: v5e
topology: v5e:2x2
jax: 0.10.0
libtpu: 0.0.40
codegen_flags: <defaults>
</compile_context>

<pallas_src>
import jax
import jax.numpy as jnp
from jax.experimental import pallas as pl
from jax.experimental.pallas import tpu as pltpu

SUBLANE = 8
TM_MAX = 512  # fixed large batch tile (review: 512-1024 hits ~85% of HBM roofline)


def _round_up(x, m):
    return ((x + m - 1) // m) * m


def _fused_affine_kernel(x_ref, w_ref, o_ref):
    # x_ref: (TM, K_pad)        -- input rows with a folded-in "ones" bias column.
    # w_ref: (K_pad, out)       -- fused weight Wf with bf folded into one row (grid-invariant).
    # o_ref: (TM, out)          -- true-width output tile (masked vst; 32x less HBM traffic
    #                              than padding out to 128 lanes for out_features=4).
    o_ref[...] = jnp.dot(
        x_ref[...], w_ref[...], preferred_element_type=jnp.float32
    ).astype(o_ref.dtype)


def make_fused_weights(params):
    """Fold the three bias-only linears into one augmented weight. Call ONCE per params
    (hoisted out of the per-forward path)."""
    w1, b1 = params["l1"]
    w2, b2 = params["l2"]
    w3, b3 = params["l3"]
    w1t, w2t, w3t = w1.T, w2.T, w3.T                      # (in, out) layouts
    # Keep the fused products in f32 even if activations are ever bf16.
    wf = (w1t.astype(jnp.float32) @ w2t.astype(jnp.float32) @ w3t.astype(jnp.float32))
    bf = ((b1.astype(jnp.float32) @ w2t.astype(jnp.float32) + b2.astype(jnp.float32))
          @ w3t.astype(jnp.float32) + b3.astype(jnp.float32))

    in_features, out_features = wf.shape
    k_pad = _round_up(in_features + 1, SUBLANE)           # +1 row carries the bias
    w_aug = jnp.zeros((k_pad, out_features), jnp.float32)
    w_aug = w_aug.at[:in_features, :].set(wf)
    w_aug = w_aug.at[in_features, :].set(bf)
    return w_aug


@jax.jit
def _blob_forward_padded(x, w_aug):
    """Per-call path: pad x, one pallas_call, slice padded rows away. Fully jitted."""
    n, in_features = x.shape
    k_pad, out_features = w_aug.shape

    # Fixed TM for large batches; clamp for tiny batches so we don't pad 8 rows to 512.
    tm = min(TM_MAX, _round_up(n, SUBLANE))
    n_rows = _round_up(n, tm)
    grid = (n_rows // tm,)

    # One fused concat + pad (no zeros + scatter passes). Padded rows get a zero
    # ones-column, so their outputs are 0 and are sliced away below.
    ones = jnp.ones((n, 1), x.dtype)
    x_aug = jnp.pad(
        jnp.concatenate([x.astype(jnp.float32), ones.astype(jnp.float32)], axis=1),
        ((0, n_rows - n), (0, k_pad - in_features - 1)),
    )

    itemsize = 4
    cost = pl.CostEstimate(
        flops=2 * n_rows * k_pad * out_features,
        transcendentals=0,
        bytes_accessed=(x_aug.size + w_aug.size + n_rows * out_features) * itemsize,
    )

    out_padded = pl.pallas_call(
        _fused_affine_kernel,
        out_shape=jax.ShapeDtypeStruct((n_rows, out_features), jnp.float32),
        grid=grid,
        in_specs=[
            pl.BlockSpec((tm, k_pad), lambda i: (i, 0)),             # batch-tiled rows
            pl.BlockSpec((k_pad, out_features), lambda i: (0, 0)),   # resident fused W
        ],
        out_specs=pl.BlockSpec((tm, out_features), lambda i: (i, 0)),
        compiler_params=pltpu.CompilerParams(
            dimension_semantics=("parallel",),   # v7x: rows may split across 2 TCs
            vmem_limit_bytes=32 * 1024 * 1024,   # huge headroom; tiles are ~50 KiB
        ),
        cost_estimate=cost,
    )(x_aug, w_aug)

    # Row slice fuses under jit; no column slice needed (true-width output).
    return out_padded[:n].astype(x.dtype)


def blob_model_forward(x, params):
    """Convenience wrapper: rebuilds fused weights (use make_fused_weights + the jitted
    forward directly in hot loops to keep weight fusion hoisted)."""
    return _blob_forward_padded(x, make_fused_weights(params))


def init_params(key, input_features, output_features, hidden_units=8):
    """Deterministic init mirroring torch.nn.Linear default (uniform +/- 1/sqrt(fan_in))."""
    def linear(k, fan_in, fan_out):
        kw, kb = jax.random.split(k)
        bound = 1.0 / jnp.sqrt(fan_in)
        w = jax.random.uniform(kw, (fan_out, fan_in), jnp.float32, -bound, bound)
        b = jax.random.uniform(kb, (fan_out,), jnp.float32, -bound, bound)
        return w, b

    k1, k2, k3 = jax.random.split(key, 3)
    return {
        "l1": linear(k1, input_features, hidden_units),
        "l2": linear(k2, hidden_units, hidden_units),
        "l3": linear(k3, hidden_units, output_features),
    }


def _reference_forward(x, params):
    w1, b1 = params["l1"]
    w2, b2 = params["l2"]
    w3, b3 = params["l3"]
    h = x @ w1.T + b1
    h = h @ w2.T + b2
    return h @ w3.T + b3


if __name__ == "__main__":
    key = jax.random.PRNGKey(0)
    k_x, k_p, k_x2, k_x3 = jax.random.split(key, 4)

    NUM_FEATURES = 2    # blob x/y coordinates (02-pytorch-multiclass)
    NUM_CLASSES = 4
    HIDDEN = 8
    BATCH = 8

    params = init_params(k_p, NUM_FEATURES, NUM_CLASSES, HIDDEN)
    # Hoist fused-weight construction out of the per-call path (once per params).
    w_aug = jax.block_until_ready(make_fused_weights(params))

    # Small batch: single grid step.
    x = jax.random.normal(k_x, (BATCH, NUM_FEATURES), dtype=jnp.float32)
    out = jax.block_until_ready(_blob_forward_padded(x, w_aug))
    ref = _reference_forward(x, params)
    assert out.shape == (BATCH, NUM_CLASSES), out.shape
    assert jnp.allclose(out, ref, atol=1e-5, rtol=1e-4), "mismatch vs reference (batch 8)"

    # Non-multiple-of-8 batch: exercises row padding.
    x2 = jax.random.normal(k_x2, (41, NUM_FEATURES), dtype=jnp.float32)
    out2 = jax.block_until_ready(_blob_forward_padded(x2, w_aug))
    ref2 = _reference_forward(x2, params)
    assert out2.shape == (41, NUM_CLASSES), out2.shape
    assert jnp.allclose(out2, ref2, atol=1e-5, rtol=1e-4), "mismatch vs reference (batch 41)"

    # Batch > TM: exercises fixed TM=512 tiling, padded final tile, multi-step grid.
    x3 = jax.random.normal(k_x3, (600, NUM_FEATURES), dtype=jnp.float32)
    out3 = jax.block_until_ready(_blob_forward_padded(x3, w_aug))
    ref3 = _reference_forward(x3, params)
    assert out3.shape == (600, NUM_CLASSES), out3.shape
    assert jnp.allclose(out3, ref3, atol=1e-5, rtol=1e-4), "mismatch vs reference (batch 600)"

    print("KERNEL_OK")
</pallas_src>

<mosaic_0001>
module attributes {stable_mosaic.version = 11 : i64} {
  func.func @_fused_affine_kernel(%arg0: i32, %arg1: memref<8x8xf32, #tpu.memory_space<vmem>>, %arg2: memref<8x4xf32, #tpu.memory_space<vmem>>, %arg3: memref<8x4xf32, #tpu.memory_space<vmem>>) attributes {dimension_semantics = [#tpu.dimension_semantics<parallel>], iteration_bounds = array<i64: 1>, scalar_prefetch = 0 : i64, scratch_operands = 0 : i64, tpu.core_type = #tpu.core_type<tc>, window_params = [{transform_indices = @transform_0, window_bounds = array<i64: 8, 8>}, {pipeline_mode = #tpu.pipeline_mode<synchronous>, transform_indices = @transform_1, window_bounds = array<i64: 8, 4>}, {transform_indices = @transform_2, window_bounds = array<i64: 8, 4>}]} {
    %c0 = arith.constant 0 : index
    %c0_0 = arith.constant 0 : index
    %0 = vector.load %arg1[%c0, %c0_0] : memref<8x8xf32, #tpu.memory_space<vmem>>, vector<8x8xf32>
    %c0_1 = arith.constant 0 : index
    %c0_2 = arith.constant 0 : index
    %1 = vector.load %arg2[%c0_1, %c0_2] : memref<8x4xf32, #tpu.memory_space<vmem>>, vector<8x4xf32>
    %cst = arith.constant dense<0.000000e+00> : vector<8x4xf32>
    %2 = tpu.matmul %0, %1, %cst {dimension_numbers = #tpu.dot_dimension_numbers<[1], [0], [0], [1], [0, 0, 1, 1], [], []>} : vector<8x8xf32>, vector<8x4xf32>, vector<8x4xf32> -> vector<8x4xf32>
    %c0_3 = arith.constant 0 : index
    %c0_4 = arith.constant 0 : index
    %3 = vector.load %arg3[%c0_3, %c0_4] : memref<8x4xf32, #tpu.memory_space<vmem>>, vector<8x4xf32>
    tpu.vector_store %arg3[%c0_3, %c0_4], %2 {strides = array<i32>} : memref<8x4xf32, #tpu.memory_space<vmem>>, vector<8x4xf32>,
    return
  }
  func.func @transform_0(%arg0: i32) -> (i32, i32) {
    %c0_i32 = arith.constant 0 : i32
    %c0_i32_0 = arith.constant 0 : i32
    return %arg0, %c0_i32 : i32, i32
  }
  func.func @transform_1(%arg0: i32) -> (i32, i32) {
    %c0_i32 = arith.constant 0 : i32
    %c0_i32_0 = arith.constant 0 : i32
    %c0_i32_1 = arith.constant 0 : i32
    return %c0_i32, %c0_i32_0 : i32, i32
  }
  func.func @transform_2(%arg0: i32) -> (i32, i32) {
    %c0_i32 = arith.constant 0 : i32
    %c0_i32_0 = arith.constant 0 : i32
    return %arg0, %c0_i32 : i32, i32
  }
}

</mosaic_0001>

<bundles_post_ra>
// kernel: _blob_forward_padded.1
= control target key start
LH: loop header
LB: loop body
LE: loop exit
PB: predicated region body
PF: predicated region fallthrough
CT: control target
= control target key end

     0   :  { %vm13_vm0 = vcmask 64512   ;;  %vm37_vm1 = vcmask 31744   ;;  %s68_s1 = inlined_call_operand.vmem [shape: f32[8,4], index: 1, kind: input, shape index: {}]   ;;  %s69_s0 = inlined_call_operand.vmem [shape: f32[8,8], index: 0, kind: input, shape index: {}]   ;;  %s70_s2 = inlined_call_operand.vmem [shape: f32[8,4], index: 2, kind: output, shape index: {}]  }
   0x1   :  { %v12_v0 = vld [vmem:[%s68_s1] sm:$0xff] }
   0x2   :  { %v11_v1 = vld [vmem:[%s69_s0] sm:$0xff]  ;;  %32 = vmatpush.msra.mxu0 %v12_v0 }
   0x3   :  { %43 = vmatmul.msk.f32.vlgmr.msra.gmra.mxu0 %vm13_vm0, %v11_v1 }
  0x80   :  { %v34_v2 = vpop.f32.mrf.mxu0 }
  0x81   :  { %38 = vst.msk [vmem:[%s70_s2] sm:$0xff] %vm37_vm1, %v34_v2 }

</bundles_post_ra>
